<compile_context>
chip_gen: v5e
topology: v5e:2x2
jax: 0.10.0
libtpu: 0.0.40
codegen_flags: <defaults>
</compile_context>

<pallas_src>
import functools

import jax
import jax.numpy as jnp
from jax.experimental import pallas as pl
from jax.experimental.pallas import tpu as pltpu


def attention_kernel(h_ref, enc_ref, w1_ref, w2_ref, b_ref, v_ref,
                     out_ref, hwb_ref, *, seq_len, t_tile):
    # h_ref:   (tB, H)       last-layer hidden state (bf16), batch tile
    # enc_ref: (tB, tT, H)   encoder outputs tile (bf16)
    # w1_ref:  (H, H)        attn weight slice applied to hidden   (transposed, bf16)
    # w2_ref:  (H, H)        attn weight slice applied to encoder  (transposed, bf16)
    # b_ref:   (1, H)        attn bias (f32)
    # v_ref:   (1, H)        scoring vector (f32, row layout -> VPU/lane-reduce path)
    # out_ref: (tB, Tp)      scores row, resident across the T axis; softmaxed at the end
    # hwb_ref: (tB, H)       VMEM scratch: hidden @ W1 + bias (f32), once per batch tile
    t = pl.program_id(1)

    # NOTE: relies on the default grid order (last axis innermost): for every
    # batch tile, t runs 0..nT-1, so hwb is (re)computed exactly once per tile.
    @pl.when(t == 0)
    def _init():
        hwb_ref[...] = (
            jnp.dot(h_ref[...], w1_ref[...], preferred_element_type=jnp.float32)
            + b_ref[...].astype(jnp.float32)
        )

    enc = enc_ref[...]                                # (tB, tT, H), bf16
    tB, tT, H = enc.shape

    # Encoder contribution: one big-M MXU matmul (tB*tT, H) @ (H, H), f32 accumulate.
    ew = jnp.dot(
        enc.reshape(tB * tT, H), w2_ref[...], preferred_element_type=jnp.float32
    ).reshape(tB, tT, H)

    # energy = tanh(h@W1 + b + enc@W2), fused immediately into the v-reduction
    # so only one (tB, tT, H) f32 temporary is live per tile.
    energy = jnp.tanh(ew + hwb_ref[...][:, None, :])

    # scores[b, t] = v . energy[b, t, :]  -- VPU multiply + lane reduce (no N=1 MXU matmul).
    v_row = v_ref[...].astype(jnp.float32)            # (1, H)
    scores = jnp.sum(energy * v_row[None, :, :], axis=-1)   # (tB, tT)

    # Mask padded sequence positions so they vanish in the softmax.
    col = t * t_tile + jax.lax.broadcasted_iota(jnp.int32, (tB, tT), 1)
    scores = jnp.where(col < seq_len, scores, jnp.float32(-1e30))

    start = pl.multiple_of(t * t_tile, t_tile)
    out_ref[:, pl.ds(start, t_tile)] = scores

    # Final T tile: softmax over the full resident (tB, Tp) scores row.
    @pl.when(t == pl.num_programs(1) - 1)
    def _softmax():
        s = out_ref[...]
        m = jnp.max(s, axis=-1, keepdims=True)
        ex = jnp.exp(s - m)
        denom = jnp.sum(ex, axis=-1, keepdims=True)
        # Exact divide (runs once per batch tile): keeps rows summing to 1 to
        # f32 precision. The approx EUP reciprocal was only ~4e-3 accurate.
        out_ref[...] = ex / denom


def _round_up(x, m):
    return (x + m - 1) // m * m


def _const_block_spec(shape):
    """BlockSpec for an operand whose block never changes: single-buffer it
    (double-buffering a constant block only wastes VMEM). Falls back to a
    plain BlockSpec if pipeline_mode/Buffered is unavailable."""
    index_map = lambda b, t: (0,) * len(shape)
    buffered = getattr(pl, "Buffered", None)
    if buffered is not None:
        try:
            return pl.BlockSpec(shape, index_map, pipeline_mode=buffered(1))
        except Exception:
            pass
    return pl.BlockSpec(shape, index_map)


def attention_forward(hidden, encoder_outputs, attn_weight, attn_bias, v,
                      *, block_b=8, block_t=512,
                      compute_dtype=jnp.bfloat16,
                      vmem_limit_bytes=48 * 1024 * 1024):
    """hidden: (L, B, H), encoder_outputs: (B, T, H), attn_weight: (H, 2H),
    attn_bias: (H,), v: (H,). Returns softmax attention weights (B, T) in f32."""
    h_last = hidden[-1]                               # (B, H)
    B, T, H = encoder_outputs.shape

    # ---- batch tile: multiple of 8 that divides B, else the full batch. ----
    if B % 8 == 0:
        tB = max(8, (min(block_b, B) // 8) * 8)
        while B % tB != 0:
            tB -= 8
        # v7x megacore: make sure the "parallel" batch axis spans >= 2 blocks
        # when the batch is large enough, so both TensorCores get work.
        if B // tB < 2 and B >= 16:
            tB = max(8, (B // 2 // 8) * 8)
            while B % tB != 0:
                tB -= 8
    else:
        tB = B
    nB = B // tB

    # ---- seq tile: lane-dense (multiple of 128), VMEM-budget aware. ----
    bytes_e = jnp.dtype(compute_dtype).itemsize
    t_tile = min(_round_up(block_t, 128), _round_up(T, 128))

    def _vmem_est(tt):
        enc_blk = 2 * tB * tt * H * bytes_e            # double-buffered enc tile
        w_blk = 2 * 2 * H * H * bytes_e                # W1 + W2 (<= 2 buffers each)
        tmp = 2 * tB * tt * H * 4                      # f32 ew/energy temporaries
        out_blk = tB * _round_up(T, tt) * 4            # resident scores row
        return enc_blk + w_blk + tmp + out_blk

    while t_tile > 128 and _vmem_est(t_tile) > int(0.7 * vmem_limit_bytes):
        t_tile -= 128

    Tp = _round_up(T, t_tile)
    nT = Tp // t_tile

    # ---- host-side prep: pad fused with the bf16 cast (one pass over enc). ----
    enc_p = encoder_outputs
    if Tp != T:
        enc_p = jnp.pad(enc_p, ((0, 0), (0, Tp - T), (0, 0)))
    enc_p = enc_p.astype(compute_dtype)
    h_c = h_last.astype(compute_dtype)

    # Split the 2H->H Linear into two H x H matmuls (hidden part / encoder part).
    wt = attn_weight.T                                # (2H, H)
    w1 = wt[:H, :].astype(compute_dtype)
    w2 = wt[H:, :].astype(compute_dtype)
    b2 = attn_bias.reshape(1, H).astype(jnp.float32)
    v2 = v.reshape(1, H).astype(jnp.float32)

    cost = pl.CostEstimate(
        flops=2 * B * Tp * H * H + 2 * B * H * H + 2 * B * Tp * H,
        transcendentals=B * Tp * H + B * Tp,
        bytes_accessed=(bytes_e * (B * Tp * H + B * H + 2 * H * H)
                        + 4 * (2 * H + 2 * B * Tp)),
    )

    kernel = functools.partial(attention_kernel, seq_len=T, t_tile=t_tile)

    out_padded = pl.pallas_call(
        kernel,
        out_shape=jax.ShapeDtypeStruct((B, Tp), jnp.float32),
        grid_spec=pltpu.PrefetchScalarGridSpec(
            num_scalar_prefetch=0,
            grid=(nB, nT),
            in_specs=[
                pl.BlockSpec((tB, H), lambda b, t: (b, 0)),
                pl.BlockSpec((tB, t_tile, H), lambda b, t: (b, t, 0)),
                _const_block_spec((H, H)),            # W1 (single-buffered)
                _const_block_spec((H, H)),            # W2 (single-buffered)
                _const_block_spec((1, H)),            # bias
                _const_block_spec((1, H)),            # v
            ],
            # Same output block for every t -> scores row stays VMEM-resident
            # across the softmax-reduction axis.
            out_specs=pl.BlockSpec((tB, Tp), lambda b, t: (b, 0)),
            scratch_shapes=[pltpu.VMEM((tB, H), jnp.float32)],
        ),
        compiler_params=pltpu.CompilerParams(
            dimension_semantics=("parallel", "arbitrary"),
            vmem_limit_bytes=vmem_limit_bytes,
        ),
        cost_estimate=cost,
    )(h_c, enc_p, w1, w2, b2, v2)

    return out_padded[:, :T]


def attention_reference(hidden, encoder_outputs, attn_weight, attn_bias, v):
    """Pure-JAX reference mirroring the PyTorch code exactly (f32)."""
    B, T, H = encoder_outputs.shape
    h = jnp.broadcast_to(hidden[-1][None, :, :], (T, B, H))      # (T, B, H)
    enc = jnp.transpose(encoder_outputs, (1, 0, 2))              # (T, B, H)
    cat = jnp.concatenate([h, enc], axis=2)                      # (T, B, 2H)
    energy = jnp.tanh(cat @ attn_weight.T + attn_bias)           # (T, B, H)
    energy = jnp.transpose(energy, (1, 2, 0))                    # (B, H, T)
    scores = jnp.einsum("h,bht->bt", v, energy)                  # (B, T)
    return jax.nn.softmax(scores, axis=1)


if __name__ == "__main__":
    # Case 1: small shapes: num_layers=1, batch=2, seq(T)=8, hidden=32
    L, B, T, H = 1, 2, 8, 32

    key = jax.random.PRNGKey(0)
    k_hid, k_enc, k_w, k_b, k_v = jax.random.split(key, 5)

    hidden = jax.random.normal(k_hid, (L, B, H), dtype=jnp.float32)
    encoder_outputs = jax.random.normal(k_enc, (B, T, H), dtype=jnp.float32)

    # deterministic parameter init (shapes follow nn.Linear(2H, H) and v ~ N(0, 1/sqrt(H)))
    bound = 1.0 / jnp.sqrt(2.0 * H)
    attn_weight = jax.random.uniform(k_w, (H, 2 * H), jnp.float32, -bound, bound)
    attn_bias = jax.random.uniform(k_b, (H,), jnp.float32, -bound, bound)
    v_param = jax.random.normal(k_v, (H,), dtype=jnp.float32) / jnp.sqrt(H)

    out = attention_forward(hidden, encoder_outputs, attn_weight, attn_bias, v_param)
    out = jax.block_until_ready(out)
    ref = attention_reference(hidden, encoder_outputs, attn_weight, attn_bias, v_param)

    assert out.shape == (B, T)
    # tolerance accounts for the bf16 matmul inputs (softmax path itself is f32)
    assert jnp.allclose(out, ref, atol=5e-3, rtol=5e-3), "mismatch vs reference (case 1)"
    assert jnp.allclose(jnp.sum(out, axis=1), 1.0, atol=1e-3), "rows do not sum to 1 (case 1)"

    # Case 2: exercises multiple seq tiles, ragged-tail masking and an 8-row batch tile.
    L2, B2, T2, H2 = 2, 8, 200, 64
    k2 = jax.random.split(jax.random.PRNGKey(0), 5)
    hidden2 = jax.random.normal(k2[0], (L2, B2, H2), dtype=jnp.float32)
    enc2 = jax.random.normal(k2[1], (B2, T2, H2), dtype=jnp.float32)
    bound2 = 1.0 / jnp.sqrt(2.0 * H2)
    w_2 = jax.random.uniform(k2[2], (H2, 2 * H2), jnp.float32, -bound2, bound2)
    b_2 = jax.random.uniform(k2[3], (H2,), jnp.float32, -bound2, bound2)
    v_2 = jax.random.normal(k2[4], (H2,), dtype=jnp.float32) / jnp.sqrt(H2)

    out2 = attention_forward(hidden2, enc2, w_2, b_2, v_2, block_t=128)
    out2 = jax.block_until_ready(out2)
    ref2 = attention_reference(hidden2, enc2, w_2, b_2, v_2)
    assert out2.shape == (B2, T2)
    assert jnp.allclose(out2, ref2, atol=5e-3, rtol=5e-3), "mismatch vs reference (case 2)"
    assert jnp.allclose(jnp.sum(out2, axis=1), 1.0, atol=1e-3), "rows do not sum to 1 (case 2)"

    print("KERNEL_OK")
</pallas_src>

<mosaic_0001>
module attributes {stable_mosaic.version = 11 : i64} {
  func.func @attention_kernel(%arg0: i32, %arg1: i32, %arg2: memref<2x32xbf16, #tpu.memory_space<vmem>>, %arg3: memref<2x128x32xbf16, #tpu.memory_space<vmem>>, %arg4: memref<32x32xbf16, #tpu.memory_space<vmem>>, %arg5: memref<32x32xbf16, #tpu.memory_space<vmem>>, %arg6: memref<1x32xf32, #tpu.memory_space<vmem>>, %arg7: memref<1x32xf32, #tpu.memory_space<vmem>>, %arg8: memref<2x128xf32, #tpu.memory_space<vmem>>, %arg9: memref<2x32xf32, #tpu.memory_space<vmem>>) attributes {dimension_semantics = [#tpu.dimension_semantics<parallel>, #tpu.dimension_semantics<arbitrary>], iteration_bounds = array<i64: 1, 1>, scalar_prefetch = 0 : i64, scratch_operands = 1 : i64, tpu.core_type = #tpu.core_type<tc>, window_params = [{transform_indices = @transform_0, window_bounds = array<i64: 2, 32>}, {transform_indices = @transform_1, window_bounds = array<i64: 2, 128, 32>}, {pipeline_mode = #tpu.pipeline_mode<synchronous>, transform_indices = @transform_2, window_bounds = array<i64: 32, 32>}, {pipeline_mode = #tpu.pipeline_mode<synchronous>, transform_indices = @transform_3, window_bounds = array<i64: 32, 32>}, {pipeline_mode = #tpu.pipeline_mode<synchronous>, transform_indices = @transform_4, window_bounds = array<i64: 1, 32>}, {pipeline_mode = #tpu.pipeline_mode<synchronous>, transform_indices = @transform_5, window_bounds = array<i64: 1, 32>}, {transform_indices = @transform_6, window_bounds = array<i64: 2, 128>}]} {
    %c0_i32 = arith.constant 0 : i32
    %0 = arith.cmpi eq, %arg1, %c0_i32 : i32
    %1 = arith.extui %0 : i1 to i32
    %c0_i32_0 = arith.constant 0 : i32
    %2 = arith.cmpi ne, %1, %c0_i32_0 : i32
    scf.if %2 {
      %c0_15 = arith.constant 0 : index
      %c0_16 = arith.constant 0 : index
      %33 = vector.load %arg2[%c0_15, %c0_16] : memref<2x32xbf16, #tpu.memory_space<vmem>>, vector<2x32xbf16>
      %c0_17 = arith.constant 0 : index
      %c0_18 = arith.constant 0 : index
      %34 = vector.load %arg4[%c0_17, %c0_18] : memref<32x32xbf16, #tpu.memory_space<vmem>>, vector<32x32xbf16>
      %cst_19 = arith.constant dense<0.000000e+00> : vector<2x32xf32>
      %35 = tpu.matmul %33, %34, %cst_19 {dimension_numbers = #tpu.dot_dimension_numbers<[1], [0], [0], [1], [0, 0, 1, 1], [], []>} : vector<2x32xbf16>, vector<32x32xbf16>, vector<2x32xf32> -> vector<2x32xf32>
      %c0_20 = arith.constant 0 : index
      %c0_21 = arith.constant 0 : index
      %36 = vector.load %arg6[%c0_20, %c0_21] : memref<1x32xf32, #tpu.memory_space<vmem>>, vector<1x32xf32>
      %37 = vector.broadcast %36 : vector<1x32xf32> to vector<2x32xf32>
      %38 = arith.addf %35, %37 : vector<2x32xf32>
      %c0_22 = arith.constant 0 : index
      %c0_23 = arith.constant 0 : index
      %39 = vector.load %arg9[%c0_22, %c0_23] : memref<2x32xf32, #tpu.memory_space<vmem>>, vector<2x32xf32>
      tpu.vector_store %arg9[%c0_22, %c0_23], %38 {strides = array<i32>} : memref<2x32xf32, #tpu.memory_space<vmem>>, vector<2x32xf32>,
    } else {
    }
    %c0 = arith.constant 0 : index
    %c0_1 = arith.constant 0 : index
    %c0_2 = arith.constant 0 : index
    %3 = vector.load %arg3[%c0, %c0_1, %c0_2] : memref<2x128x32xbf16, #tpu.memory_space<vmem>>, vector<2x128x32xbf16>
    %4 = vector.shape_cast %3 : vector<2x128x32xbf16> to vector<256x32xbf16>
    %c0_3 = arith.constant 0 : index
    %c0_4 = arith.constant 0 : index
    %5 = vector.load %arg5[%c0_3, %c0_4] : memref<32x32xbf16, #tpu.memory_space<vmem>>, vector<32x32xbf16>
    %cst = arith.constant dense<0.000000e+00> : vector<256x32xf32>
    %6 = tpu.matmul %4, %5, %cst {dimension_numbers = #tpu.dot_dimension_numbers<[1], [0], [0], [1], [0, 0, 1, 1], [], []>} : vector<256x32xbf16>, vector<32x32xbf16>, vector<256x32xf32> -> vector<256x32xf32>
    %7 = vector.shape_cast %6 : vector<256x32xf32> to vector<2x128x32xf32>
    %c0_5 = arith.constant 0 : index
    %c0_6 = arith.constant 0 : index
    %8 = vector.load %arg9[%c0_5, %c0_6] : memref<2x32xf32, #tpu.memory_space<vmem>>, vector<2x32xf32>
    %9 = vector.shape_cast %8 : vector<2x32xf32> to vector<2x1x32xf32>
    %10 = vector.broadcast %9 : vector<2x1x32xf32> to vector<2x128x32xf32>
    %11 = arith.addf %7, %10 : vector<2x128x32xf32>
    %12 = math.tanh %11 : vector<2x128x32xf32>
    %c0_7 = arith.constant 0 : index
    %c0_8 = arith.constant 0 : index
    %13 = vector.load %arg7[%c0_7, %c0_8] : memref<1x32xf32, #tpu.memory_space<vmem>>, vector<1x32xf32>
    %14 = vector.shape_cast %13 : vector<1x32xf32> to vector<1x1x32xf32>
    %15 = vector.broadcast %14 : vector<1x1x32xf32> to vector<2x128x32xf32>
    %16 = arith.mulf %12, %15 : vector<2x128x32xf32>
    %cst_9 = arith.constant dense<0.000000e+00> : vector<2x128xf32>
    %17 = vector.multi_reduction <add>, %16, %cst_9 [2] : vector<2x128x32xf32> to vector<2x128xf32>
    %c128_i32 = arith.constant 128 : i32
    %18 = arith.muli %arg1, %c128_i32 : i32
    %19 = tpu.iota {dimensions = array<i32: 1>} : vector<2x128xi32>
    %20 = vector.broadcast %18 : i32 to vector<2x128xi32>
    %21 = arith.addi %20, %19 : vector<2x128xi32>
    %c8_i32 = arith.constant 8 : i32
    %22 = vector.broadcast %c8_i32 : i32 to vector<2x128xi32>
    %23 = arith.cmpi slt, %21, %22 : vector<2x128xi32>
    %cst_10 = arith.constant -1.000000e+30 : f32
    %24 = vector.broadcast %cst_10 : f32 to vector<2x128xf32>
    %25 = arith.select %23, %17, %24 : vector<2x128xi1>, vector<2x128xf32>
    %c128_i32_11 = arith.constant 128 : i32
    %26 = arith.muli %arg1, %c128_i32_11 : i32
    %27 = tpu.assume_multiple %26, 128 : i32
    %c0_12 = arith.constant 0 : index
    %28 = arith.index_cast %27 : i32 to index
    %29 = vector.load %arg8[%c0_12, %28] : memref<2x128xf32, #tpu.memory_space<vmem>>, vector<2x128xf32>
    tpu.vector_store %arg8[%c0_12, %28], %25 {strides = array<i32>} : memref<2x128xf32, #tpu.memory_space<vmem>>, vector<2x128xf32>,
    %c0_i32_13 = arith.constant 0 : i32
    %30 = arith.cmpi eq, %arg1, %c0_i32_13 : i32
    %31 = arith.extui %30 : i1 to i32
    %c0_i32_14 = arith.constant 0 : i32
    %32 = arith.cmpi ne, %31, %c0_i32_14 : i32
    scf.if %32 {
      %c0_15 = arith.constant 0 : index
      %c0_16 = arith.constant 0 : index
      %33 = vector.load %arg8[%c0_15, %c0_16] : memref<2x128xf32, #tpu.memory_space<vmem>>, vector<2x128xf32>
      %cst_17 = arith.constant dense<0xFF800000> : vector<2xf32>
      %34 = vector.multi_reduction <maximumf>, %33, %cst_17 [1] : vector<2x128xf32> to vector<2xf32>
      %35 = vector.shape_cast %34 : vector<2xf32> to vector<2x1xf32>
      %36 = vector.broadcast %35 : vector<2x1xf32> to vector<2x128xf32>
      %37 = arith.subf %33, %36 : vector<2x128xf32>
      %38 = math.exp %37 : vector<2x128xf32>
      %cst_18 = arith.constant dense<0.000000e+00> : vector<2xf32>
      %39 = vector.multi_reduction <add>, %38, %cst_18 [1] : vector<2x128xf32> to vector<2xf32>
      %40 = vector.shape_cast %39 : vector<2xf32> to vector<2x1xf32>
      %41 = vector.broadcast %40 : vector<2x1xf32> to vector<2x128xf32>
      %42 = arith.divf %38, %41 : vector<2x128xf32>
      %c0_19 = arith.constant 0 : index
      %c0_20 = arith.constant 0 : index
      %43 = vector.load %arg8[%c0_19, %c0_20] : memref<2x128xf32, #tpu.memory_space<vmem>>, vector<2x128xf32>
      tpu.vector_store %arg8[%c0_19, %c0_20], %42 {strides = array<i32>} : memref<2x128xf32, #tpu.memory_space<vmem>>, vector<2x128xf32>,
    } else {
    }
    return
  }
  func.func @transform_0(%arg0: i32, %arg1: i32) -> (i32, i32) {
    %c0_i32 = arith.constant 0 : i32
    %c0_i32_0 = arith.constant 0 : i32
    return %arg0, %c0_i32 : i32, i32
  }
  func.func @transform_1(%arg0: i32, %arg1: i32) -> (i32, i32, i32) {
    %c0_i32 = arith.constant 0 : i32
    %c0_i32_0 = arith.constant 0 : i32
    return %arg0, %arg1, %c0_i32 : i32, i32, i32
  }
  func.func @transform_2(%arg0: i32, %arg1: i32) -> (i32, i32) {
    %c0_i32 = arith.constant 0 : i32
    %c0_i32_0 = arith.constant 0 : i32
    %c0_i32_1 = arith.constant 0 : i32
    return %c0_i32, %c0_i32_0 : i32, i32
  }
  func.func @transform_3(%arg0: i32, %arg1: i32) -> (i32, i32) {
    %c0_i32 = arith.constant 0 : i32
    %c0_i32_0 = arith.constant 0 : i32
    %c0_i32_1 = arith.constant 0 : i32
    return %c0_i32, %c0_i32_0 : i32, i32
  }
  func.func @transform_4(%arg0: i32, %arg1: i32) -> (i32, i32) {
    %c0_i32 = arith.constant 0 : i32
    %c0_i32_0 = arith.constant 0 : i32
    %c0_i32_1 = arith.constant 0 : i32
    return %c0_i32, %c0_i32_0 : i32, i32
  }
  func.func @transform_5(%arg0: i32, %arg1: i32) -> (i32, i32) {
    %c0_i32 = arith.constant 0 : i32
    %c0_i32_0 = arith.constant 0 : i32
    %c0_i32_1 = arith.constant 0 : i32
    return %c0_i32, %c0_i32_0 : i32, i32
  }
  func.func @transform_6(%arg0: i32, %arg1: i32) -> (i32, i32) {
    %c0_i32 = arith.constant 0 : i32
    %c0_i32_0 = arith.constant 0 : i32
    return %arg0, %c0_i32 : i32, i32
  }
}

</mosaic_0001>

<bundles_post_ra>
// kernel: tpu_custom_call.1
= control target key start
LH: loop header
LB: loop body
LE: loop exit
PB: predicated region body
PF: predicated region fallthrough
CT: control target
= control target key end

     0   :  { %s1247_s0 = inlined_call_operand.vmem [shape: bf16[2,32], index: 0, kind: input, shape index: {}]   ;;  %s1248_s1 = inlined_call_operand.vmem [shape: bf16[2,128,32], index: 1, kind: input, shape index: {}]   ;;  %s1249_s2 = inlined_call_operand.vmem [shape: bf16[32,32], index: 2, kind: input, shape index: {}]   ;;  %s1250_s3 = inlined_call_operand.vmem [shape: bf16[32,32], index: 3, kind: input, shape index: {}]   ;;  %s1251_s4 = inlined_call_operand.vmem [shape: f32[1,32], index: 4, kind: input, shape index: {}]   ;;  %s1252_s5 = inlined_call_operand.vmem [shape: f32[1,32], index: 5, kind: input, shape index: {}]   ;;  %s1253_s6 = inlined_call_operand.hbm [shape: f32[2,128], index: 6, kind: output, shape index: {}]  }
   0x1   :  { %v821_v0 = vld [vmem:[%s1249_s2 + $0x8] sm:$0xff]  ;;  %v820_v2 = vld [vmem:[%s1249_s2] sm:$0xff] }
   0x2   :  { %v839_v1 = vld [vmem:[%s1250_s3 + $0x8] sm:$0xff]  ;;  %60 = vmatpush.bf16.msra.mxu0 %v821_v0  ;;  %v838_v3 = vld [vmem:[%s1250_s3] sm:$0xff] }
   0x3   :  { %840 = vmatpush.bf16.msra.mxu1 %v839_v1  ;;  %841 = vmatpush.bf16.msra.mxu2 %v839_v1  ;;  %v823_v4 = vld [vmem:[%s1248_s1 + $0x8] sm:$0xff] }
   0x4   :  { %842 = vmatpush.bf16.msra.mxu3 %v839_v1 }
   0x5   :  { %11 = vsyncpa [#allocation4], 0  ;;  %v29_v5 = vld [vmem:[%s1247_s0] sm:$0x1]  ;;  %vm50_vm0 = vcmask 261120   ;;  %v828_v6 = vld [vmem:[%s1248_s1 + $0x30] sm:$0xff] }
   0x6   :  { %61 = vmatpush.bf16.msra.mxu0 %v820_v2  ;;  %v833_v7 = vld [vmem:[%s1248_s1 + $0x58] sm:$0xff]  ;;  %v822_v8 = vld [vmem:[%s1248_s1] sm:$0xff]  ;;  %v824_v9 = vld [vmem:[%s1248_s1 + $0x10] sm:$0xff]  ;;  %vm67_vm1 = vcmask 254976   ;;  %vm579_vm2 = vcmask 130112   ;;  %vm583_vm3 = vcmask 195712  }
   0x7   :  { %843 = vmatpush.bf16.msra.mxu1 %v838_v3  ;;  %844 = vmatpush.bf16.msra.mxu2 %v838_v3  ;;  %v829_v10 = vld [vmem:[%s1248_s1 + $0x38] sm:$0xff]  ;;  %v834_v11 = vld [vmem:[%s1248_s1 + $0x60] sm:$0xff]  ;;  %v835_v14 = vld [vmem:[%s1248_s1 + $0x68] sm:$0xff]  ;;  %vm587_vm4 = vcmask 261312   ;;  %vm591_vm5 = vcmask 326912   ;;  %vm595_vm6 = vcmask 392512  }
   0x8   :  { %845 = vmatpush.bf16.msra.mxu3 %v838_v3  ;;  %v825_v12 = vld [vmem:[%s1248_s1 + $0x18] sm:$0xff]  ;;  %v830_v13 = vld [vmem:[%s1248_s1 + $0x40] sm:$0xff]  ;;  %v831_v16 = vld [vmem:[%s1248_s1 + $0x48] sm:$0xff]  ;;  %vm599_vm7 = vcmask 458112   ;;  %vm603_vm8 = vcmask 523712   ;;  %vm607_vm9 = vcmask 589312  }
   0x9   :  { %731 = vmatmul.msk.bf16.vlgmr.msra.gmra.mxu0 %vm50_vm0, %v29_v5  ;;  %v826_v15 = vld [vmem:[%s1248_s1 + $0x20] sm:$0xff]  ;;  %v836_v17 = vld [vmem:[%s1248_s1 + $0x70] sm:$0xff]  ;;  %v827_v18 = vld [vmem:[%s1248_s1 + $0x28] sm:$0xff]  ;;  %vm611_vm10 = vcmask 654912   ;;  %vm615_vm11 = vcmask 720512   ;;  %vm619_vm12 = vcmask 786112  }
   0xa   :  { %252 = vmatpush.bf16.msrb.mxu0 %v839_v1  ;;  %805 = vmatmul.msk.bf16.vlgmr.msra.gmra.mxu1 %vm50_vm0, %v823_v4  ;;  %v832_v19 = vld [vmem:[%s1248_s1 + $0x50] sm:$0xff]  ;;  %v837_v20 = vld [vmem:[%s1248_s1 + $0x78] sm:$0xff]  ;;  %v847_v21 = vld [vmem:[%s1251_s4] ss:$0 sm:$0xff]  ;;  %vm623_vm13 = vcmask 851712   ;;  %vm627_vm14 = vcmask 917312  }
   0xb   :  { %810 = vmatmul.msk.bf16.vlgmr.msra.gmra.mxu2 %vm50_vm0, %v828_v6  ;;  %815 = vmatmul.msk.bf16.vlgmr.msra.gmra.mxu3 %vm50_vm0, %v833_v7  ;;  %v1077_v42 = vld [vmem:[%s1252_s5] ss:$0 sm:$0xff]  ;;  %vm631_vm15 = vcmask 982912   ;;  %s943_s5 = smov [#allocation3]   ;;  %s713_s14 = sshll.u32 %s1253_s6, 4  ;;  %s714_s14 = int_to_ptr.hbm [resolvable:$true] %s713_s14 }
   0xc   :  { %s711_s11 = sshll.u32 %s943_s5, 4  ;;  %s712_s11 = int_to_ptr.vmem [resolvable:$true] %s711_s11 }
   0xe   :  { %253 = vmatpush.bf16.msrb.mxu0 %v838_v3 }
  0x19   :  { %804 = vmatmul.msk.bf16.vlgmr.msrb.gmra.mxu0 %vm50_vm0, %v822_v8 }
  0x1a   :  { %806 = vmatmul.msk.bf16.gmra.mxu1 %vm50_vm0, %v824_v9 }
  0x1b   :  { %811 = vmatmul.msk.bf16.gmra.mxu2 %vm50_vm0, %v829_v10  ;;  %816 = vmatmul.msk.bf16.gmra.mxu3 %vm50_vm0, %v834_v11 }
  0x2a   :  { %807 = vmatmul.msk.bf16.gmra.mxu1 %vm50_vm0, %v825_v12 }
  0x2b   :  { %812 = vmatmul.msk.bf16.gmra.mxu2 %vm50_vm0, %v830_v13  ;;  %817 = vmatmul.msk.bf16.gmra.mxu3 %vm50_vm0, %v835_v14 }
  0x3a   :  { %808 = vmatmul.msk.bf16.gmra.mxu1 %vm50_vm0, %v826_v15 }
  0x3b   :  { %813 = vmatmul.msk.bf16.gmra.mxu2 %vm50_vm0, %v831_v16  ;;  %818 = vmatmul.msk.bf16.gmra.mxu3 %vm50_vm0, %v836_v17 }
  0x4a   :  { %809 = vmatmul.msk.bf16.gmra.mxu1 %vm50_vm0, %v827_v18 }
  0x4b   :  { %814 = vmatmul.msk.bf16.gmra.mxu2 %vm50_vm0, %v832_v19  ;;  %819 = vmatmul.msk.bf16.gmra.mxu3 %vm50_vm0, %v837_v20 }
  0x86   :  { %v63_v22 = vpop.f32.mrf.mxu0 }
  0x87   :  { %v260_v23 = vpop.f32.mrf.mxu1  ;;  %v64_v24 = vadd.f32 %v847_v21, %v63_v22 }
  0x89   :  { %68 = vst.msk [vmem:[#allocation2] sm:$0x3] %vm67_vm1, %v64_v24  ;;  %vm668_vm1 = vcmask 1041409  }
  0x8e   :  { %v285_v25 = vpop.f32.mrf.mxu2  ;;  %v310_v26 = vpop.f32.mrf.mxu3 }
  0x8f   :  { %v65_v27 = vpop.f32.mrf.mxu0  ;;  %v262_v28 = vpop.f32.mrf.mxu1 }
  0x90   :  { %v335_v29 = vld [vmem:[#allocation2] sm:$0x3] }
  0x91   :  { %v337_v30 = vrot.slane %v335_v29, 1  ;;  %v1062_v31 = vperm.slane %v335_v29, 0 }
  0x93   :  { %v1064_v32 = vperm.slane %v337_v30, 0  ;;  %v344_v33 = vadd.f32 %v1062_v31, %v260_v23  ;;  %v345_v34 = vadd.f32 %v1062_v31, %v262_v28  ;;  %v354_v40 = vadd.f32 %v1062_v31, %v285_v25 }
  0x95   :  { %849 = vtanh.f32 %v344_v33  ;;  %v364_v35 = vadd.f32 %v1064_v32, %v310_v26 }
  0x96   :  { %v287_v36 = vpop.f32.mrf.mxu2  ;;  %v312_v37 = vpop.f32.mrf.mxu3 }
  0x97   :  { %v1070_v38 = vadd.f32 %v1062_v31, %v287_v36  ;;  %v265_v39 = vpop.f32.mrf.mxu1  ;;  %851 = vtanh.f32 %v364_v35  ;;  %v365_v56 = vadd.f32 %v1064_v32, %v312_v37  ;;  %v255_v61 = vpop.f32.mrf.mxu0 }
  0x98   :  { %853 = vtanh.f32 %v345_v34  ;;  %v346_v41 = vadd.f32 %v1062_v31, %v265_v39  ;;  %v342_v7 = vadd.f32 %v1062_v31, %v255_v61 }
  0x99   :  { %855 = vtanh.f32 %v354_v40 }
  0x9a   :  { %857 = vtanh.f32 %v346_v41 }
  0x9b   :  { %v850_v43 = vpop.eup %849 }
  0x9c   :  { %v412_v44 = vmul.f32 %v850_v43, %v1077_v42 }
  0x9d   :  { %v852_v45 = vpop.eup %851 }
  0x9e   :  { %v290_v46 = vpop.f32.mrf.mxu2  ;;  %v315_v47 = vpop.f32.mrf.mxu3  ;;  %v448_v52 = vsel %vm50_vm0, %v412_v44, 0.0  ;;  %v432_v53 = vmul.f32 %v852_v45, %v1077_v42 }
  0x9f   :  { %v854_v48 = vpop.eup %853  ;;  %v1081_v49 = vadd.f32 %v1062_v31, %v290_v46  ;;  %v366_v50 = vadd.f32 %v1064_v32, %v315_v47  ;;  %v267_v51 = vpop.f32.mrf.mxu1  ;;  %449 = vadd.xlane.f32.xlu2 %v448_v52 }
  0xa0   :  { %v347_v54 = vadd.f32 %v1062_v31, %v267_v51  ;;  %v413_v55 = vmul.f32 %v854_v48, %v1077_v42  ;;  %v508_v57 = vsel %vm50_vm0, %v432_v53, 0.0  ;;  %v856_v58 = vpop.eup %855  ;;  %v257_v13 = vpop.f32.mrf.mxu0 }
  0xa1   :  { %859 = vtanh.f32 %v366_v50  ;;  %509 = vadd.xlane.f32.xlu1 %v508_v57  ;;  %v858_v60 = vpop.eup %857  ;;  %v422_v1 = vmul.f32 %v856_v58, %v1077_v42  ;;  %v343_v23 = vadd.f32 %v1062_v31, %v257_v13 }
  0xa2   :  { %v451_v59 = vsel %vm50_vm0, %v413_v55, 0.0  ;;  %861 = vtanh.f32 %v347_v54  ;;  %v414_v62 = vmul.f32 %v858_v60, %v1077_v42 }
  0xa3   :  { %452 = vadd.xlane.f32.xlu0 %v451_v59  ;;  %863 = vtanh.f32 %v365_v56  ;;  %v478_v9 = vsel %vm50_vm0, %v422_v1, 0.0 }
  0xa4   :  { %v454_v5 = vsel %vm50_vm0, %v414_v62, 0.0 }
  0xa6   :  { %v292_v63 = vpop.f32.mrf.mxu2  ;;  %v317_v0 = vpop.f32.mrf.mxu3 }
  0xa7   :  { %v1094_v2 = vadd.f32 %v1062_v31, %v292_v63  ;;  %v367_v3 = vadd.f32 %v1064_v32, %v317_v0  ;;  %v270_v4 = vpop.f32.mrf.mxu1  ;;  %v860_v6 = vpop.eup %859  ;;  %455 = vadd.xlane.f32.xlu2 %v454_v5 }
  0xa8   :  { %v862_v8 = vpop.eup %861  ;;  %v434_v12 = vmul.f32 %v860_v6, %v1077_v42  ;;  %v348_v39 = vadd.f32 %v1062_v31, %v270_v4 }
  0xa9   :  { %865 = vtanh.f32 %v367_v3  ;;  %v864_v10 = vpop.eup %863  ;;  %v415_v11 = vmul.f32 %v862_v8, %v1077_v42 }
  0xaa   :  { %867 = vtanh.f32 %v342_v7  ;;  %v433_v17 = vmul.f32 %v864_v10, %v1077_v42  ;;  %v514_v20 = vsel %vm50_vm0, %v434_v12, 0.0 }
  0xab   :  { %479 = vadd.xlane.f32.xlu0 %v478_v9  ;;  %v457_v14 = vsel %vm50_vm0, %v415_v11, 0.0 }
  0xac   :  { %458 = vadd.xlane.f32.xlu1 %v457_v14  ;;  %v511_v25 = vsel %vm50_vm0, %v433_v17, 0.0 }
  0xae   :  { %v295_v15 = vpop.f32.mrf.mxu2  ;;  %v320_v16 = vpop.f32.mrf.mxu3 }
  0xaf   :  { %v358_v18 = vadd.f32 %v1064_v32, %v295_v15  ;;  %v272_v19 = vpop.f32.mrf.mxu1  ;;  %v866_v21 = vpop.eup %865  ;;  %515 = vadd.xlane.f32.xlu2 %v514_v20  ;;  %v368_v55 = vadd.f32 %v1064_v32, %v320_v16 }
  0xb0   :  { %v349_v22 = vadd.f32 %v1062_v31, %v272_v19  ;;  %v435_v24 = vmul.f32 %v866_v21, %v1077_v42  ;;  %v868_v26 = vpop.eup %867 }
  0xb1   :  { %869 = vtanh.f32 %v358_v18  ;;  %v410_v30 = vmul.f32 %v868_v26, %v1077_v42 }
  0xb2   :  { %871 = vtanh.f32 %v349_v22  ;;  %v517_v27 = vsel %vm50_vm0, %v435_v24, 0.0 }
  0xb3   :  { %512 = vadd.xlane.f32.xlu0 %v511_v25  ;;  %873 = vtanh.f32 %v343_v23  ;;  %v442_v41 = vsel %vm50_vm0, %v410_v30, 0.0 }
  0xb4   :  { %518 = vadd.xlane.f32.xlu1 %v517_v27 }
  0xb6   :  { %v297_v28 = vpop.f32.mrf.mxu2  ;;  %v322_v29 = vpop.f32.mrf.mxu3 }
  0xb7   :  { %v870_v33 = vpop.eup %869  ;;  %v359_v34 = vadd.f32 %v1064_v32, %v297_v28  ;;  %v369_v35 = vadd.f32 %v1064_v32, %v322_v29  ;;  %v275_v36 = vpop.f32.mrf.mxu1 }
  0xb8   :  { %v872_v37 = vpop.eup %871  ;;  %v426_v40 = vmul.f32 %v870_v33, %v1077_v42  ;;  %v350_v45 = vadd.f32 %v1062_v31, %v275_v36 }
  0xb9   :  { %875 = vtanh.f32 %v359_v34  ;;  %v417_v43 = vmul.f32 %v872_v37, %v1077_v42  ;;  %v874_v44 = vpop.eup %873 }
  0xba   :  { %877 = vtanh.f32 %v369_v35  ;;  %v490_v47 = vsel %vm50_vm0, %v426_v40, 0.0  ;;  %v411_v50 = vmul.f32 %v874_v44, %v1077_v42 }
  0xbb   :  { %443 = vadd.xlane.f32.xlu0 %v442_v41  ;;  %v463_v46 = vsel %vm50_vm0, %v417_v43, 0.0  ;;  %879 = vtanh.f32 %v348_v39 }
  0xbc   :  { %464 = vadd.xlane.f32.xlu2 %v463_v46  ;;  %491 = vadd.xlane.f32.xlu1 %v490_v47  ;;  %881 = vtanh.f32 %v350_v45  ;;  %v445_v59 = vsel %vm50_vm0, %v411_v50, 0.0 }
  0xbe   :  { %v300_v48 = vpop.f32.mrf.mxu2  ;;  %v325_v56 = vpop.f32.mrf.mxu3 }
  0xbf   :  { %v876_v51 = vpop.eup %875  ;;  %v360_v52 = vadd.f32 %v1064_v32, %v300_v48  ;;  %v277_v53 = vpop.f32.mrf.mxu1  ;;  %v370_v61 = vadd.f32 %v1064_v32, %v325_v56 }
  0xc0   :  { %v878_v54 = vpop.eup %877  ;;  %v427_v58 = vmul.f32 %v876_v51, %v1077_v42  ;;  %v351_v8 = vadd.f32 %v1062_v31, %v277_v53 }
  0xc1   :  { %883 = vtanh.f32 %v360_v52  ;;  %v437_v57 = vmul.f32 %v878_v54, %v1077_v42  ;;  %v880_v60 = vpop.eup %879 }
  0xc2   :  { %885 = vtanh.f32 %v368_v55  ;;  %v493_v63 = vsel %vm50_vm0, %v427_v58, 0.0  ;;  %v882_v0 = vpop.eup %881  ;;  %v416_v3 = vmul.f32 %v880_v60, %v1077_v42 }
  0xc3   :  { %446 = vadd.xlane.f32.xlu0 %v445_v59  ;;  %v523_v62 = vsel %vm50_vm0, %v437_v57, 0.0  ;;  %887 = vtanh.f32 %v370_v61  ;;  %v418_v9 = vmul.f32 %v882_v0, %v1077_v42 }
  0xc4   :  { %524 = vadd.xlane.f32.xlu2 %v523_v62  ;;  %494 = vadd.xlane.f32.xlu1 %v493_v63  ;;  %v460_v10 = vsel %vm50_vm0, %v416_v3, 0.0 }
  0xc5   :  { %v466_v15 = vsel %vm50_vm0, %v418_v9, 0.0 }
  0xc6   :  { %v302_v1 = vpop.f32.mrf.mxu2  ;;  %v327_v14 = vpop.f32.mrf.mxu3 }
  0xc7   :  { %v884_v4 = vpop.eup %883  ;;  %v280_v5 = vpop.f32.mrf.mxu1  ;;  %v361_v12 = vadd.f32 %v1064_v32, %v302_v1  ;;  %v371_v36 = vadd.f32 %v1064_v32, %v327_v14 }
  0xc8   :  { %v352_v6 = vadd.f32 %v1062_v31, %v280_v5  ;;  %v428_v7 = vmul.f32 %v884_v4, %v1077_v42  ;;  %v886_v11 = vpop.eup %885 }
  0xc9   :  { %v888_v16 = vpop.eup %887  ;;  %v436_v18 = vmul.f32 %v886_v11, %v1077_v42 }
  0xca   :  { %889 = vtanh.f32 %v352_v6  ;;  %v496_v13 = vsel %vm50_vm0, %v428_v7, 0.0  ;;  %v438_v22 = vmul.f32 %v888_v16, %v1077_v42 }
  0xcb   :  { %461 = vadd.xlane.f32.xlu0 %v460_v10  ;;  %891 = vtanh.f32 %v351_v8  ;;  %v520_v23 = vsel %vm50_vm0, %v436_v18, 0.0 }
  0xcc   :  { %497 = vadd.xlane.f32.xlu2 %v496_v13  ;;  %467 = vadd.xlane.f32.xlu1 %v466_v15  ;;  %893 = vtanh.f32 %v361_v12  ;;  %v526_v28 = vsel %vm50_vm0, %v438_v22, 0.0 }
  0xce   :  { %v305_v17 = vpop.f32.mrf.mxu2  ;;  %v330_v34 = vpop.f32.mrf.mxu3 }
  0xcf   :  { %v362_v20 = vadd.f32 %v1064_v32, %v305_v17  ;;  %v282_v21 = vpop.f32.mrf.mxu1  ;;  %v372_v46 = vadd.f32 %v1064_v32, %v330_v34  ;;  %v539_v17 = vlaneseq }
  0xd0   :  { %v890_v19 = vpop.eup %889  ;;  %v353_v26 = vadd.f32 %v1062_v31, %v282_v21 }
  0xd1   :  { %v420_v24 = vmul.f32 %v890_v19, %v1077_v42  ;;  %v892_v25 = vpop.eup %891  ;;  %895 = vtanh.f32 %v362_v20  ;;  %v1188_v20 = vand.u32 127, %v539_v17 }
  0xd2   :  { %v894_v29 = vpop.eup %893  ;;  %v419_v33 = vmul.f32 %v892_v25, %v1077_v42  ;;  %897 = vtanh.f32 %v353_v26 }
  0xd3   :  { %521 = vadd.xlane.f32.xlu0 %v520_v23  ;;  %v472_v27 = vsel %vm50_vm0, %v420_v24, 0.0  ;;  %v429_v31 = vmul.f32 %v894_v29, %v1077_v42  ;;  %v577_v21 = vadd.s32 4294967288, %v1188_v20  ;;  %v581_v25 = vadd.s32 4294967280, %v1188_v20 }
  0xd4   :  { %473 = vadd.xlane.f32.xlu2 %v472_v27  ;;  %527 = vadd.xlane.f32.xlu1 %v526_v28  ;;  %v469_v37 = vsel %vm50_vm0, %v419_v33, 0.0  ;;  %v585_v28 = vadd.s32 4294967272, %v1188_v20  ;;  %v589_v34 = vadd.s32 4294967264, %v1188_v20 }
  0xd5   :  { %v499_v40 = vsel %vm50_vm0, %v429_v31, 0.0 }
  0xd6   :  { %v307_v30 = vpop.f32.mrf.mxu2  ;;  %v332_v47 = vpop.f32.mrf.mxu3 }
  0xd7   :  { %v363_v35 = vadd.f32 %v1064_v32, %v307_v30  ;;  %v896_v39 = vpop.eup %895  ;;  %v373_v53 = vadd.f32 %v1064_v32, %v332_v47 }
  0xd8   :  { %v898_v41 = vpop.eup %897  ;;  %v430_v43 = vmul.f32 %v896_v39, %v1077_v42 }
  0xd9   :  { %899 = vtanh.f32 %v363_v35  ;;  %v421_v48 = vmul.f32 %v898_v41, %v1077_v42 }
  0xda   :  { %901 = vtanh.f32 %v1070_v38  ;;  %v502_v38 = vsel %vm50_vm0, %v430_v43, 0.0 }
  0xdb   :  { %470 = vadd.xlane.f32.xlu0 %v469_v37  ;;  %903 = vtanh.f32 %v371_v36  ;;  %v593_v37 = vadd.s32 4294967256, %v1188_v20 }
  0xdc   :  { %500 = vadd.xlane.f32.xlu1 %v499_v40  ;;  %905 = vtanh.f32 %v1081_v49  ;;  %v475_v49 = vsel %vm50_vm0, %v421_v48, 0.0  ;;  %v597_v40 = vadd.s32 4294967248, %v1188_v20  ;;  %v605_v48 = vadd.s32 4294967232, %v1188_v20 }
  0xdd   :  { %907 = vtanh.f32 %v1094_v2 }
  0xde   :  { %909 = vtanh.f32 %v372_v46 }
  0xdf   :  { %v900_v44 = vpop.eup %899  ;;  %911 = vtanh.f32 %v373_v53 }
  0xe0   :  { %v431_v45 = vmul.f32 %v900_v44, %v1077_v42  ;;  %v902_v50 = vpop.eup %901 }
  0xe1   :  { %v904_v52 = vpop.eup %903  ;;  %v423_v56 = vmul.f32 %v902_v50, %v1077_v42  ;;  %v601_v50 = vadd.s32 4294967240, %v1188_v20 }
  0xe2   :  { %v505_v51 = vsel %vm50_vm0, %v431_v45, 0.0  ;;  %v906_v54 = vpop.eup %905  ;;  %v439_v55 = vmul.f32 %v904_v52, %v1077_v42 }
  0xe3   :  { %503 = vadd.xlane.f32.xlu0 %v502_v38  ;;  %506 = vadd.xlane.f32.xlu2 %v505_v51  ;;  %v424_v57 = vmul.f32 %v906_v54, %v1077_v42  ;;  %v908_v58 = vpop.eup %907  ;;  %v481_v60 = vsel %vm50_vm0, %v423_v56, 0.0  ;;  %v609_v51 = vadd.s32 4294967224, %v1188_v20 }
  0xe4   :  { %476 = vadd.xlane.f32.xlu1 %v475_v49  ;;  %v529_v59 = vsel %vm50_vm0, %v439_v55, 0.0  ;;  %v910_v2 = vpop.eup %909  ;;  %v425_v62 = vmul.f32 %v908_v58, %v1077_v42 }
  0xe5   :  { %v484_v32 = vsel %vm50_vm0, %v424_v57, 0.0  ;;  %v912_v61 = vpop.eup %911  ;;  %v440_v63 = vmul.f32 %v910_v2, %v1077_v42 }
  0xe6   :  { %v441_v0 = vmul.f32 %v912_v61, %v1077_v42  ;;  %v487_v1 = vsel %vm50_vm0, %v425_v62, 0.0  ;;  %v613_v61 = vadd.s32 4294967216, %v1188_v20 }
  0xe7   :  { %v532_v3 = vsel %vm50_vm0, %v440_v63, 0.0 }
  0xe8   :  { %v535_v4 = vsel %vm50_vm0, %v441_v0, 0.0  ;;  %vm635_vm0 = vcmask 1048512  }
  0xeb   :  { %530 = vadd.xlane.f32.xlu0 %v529_v59  ;;  %482 = vadd.xlane.f32.xlu2 %v481_v60  ;;  %v621_v60 = vadd.s32 4294967200, %v1188_v20 }
  0xec   :  { %485 = vadd.xlane.f32.xlu1 %v484_v32 }
  0xf3   :  { %488 = vadd.xlane.f32.xlu0 %v487_v1  ;;  %533 = vadd.xlane.f32.xlu2 %v532_v3 }
  0xf4   :  { %536 = vadd.xlane.f32.xlu1 %v535_v4 }
 0x112   :  { %v450_v5 = vpop.xlane.xlu2 %449 }
 0x113   :  { %v582_v33 = vperm.slane %v450_v5, %v581_v25  ;;  %v617_v5 = vadd.s32 4294967208, %v1188_v20 }
 0x114   :  { %v1176_v7 = vpop.xlane.xlu1 %509 }
 0x116   :  { %v453_v6 = vpop.xlane.xlu0 %452 }
 0x117   :  { %v586_v31 = vperm.slane %v453_v6, %v585_v28 }
 0x11a   :  { %v456_v9 = vpop.xlane.xlu2 %455 }
 0x11b   :  { %v590_v41 = vperm.slane %v456_v9, %v589_v34 }
 0x11e   :  { %v1178_v8 = vpop.xlane.xlu0 %479 }
 0x11f   :  { %v459_v10 = vpop.xlane.xlu1 %458 }
 0x120   :  { %v594_v47 = vperm.slane %v459_v10, %v593_v37  ;;  %v648_v10 = vperm.slane %v1176_v7, %v597_v40 }
 0x122   :  { %v1182_v42 = vpop.xlane.xlu2 %515 }
 0x126   :  { %v1180_v11 = vpop.xlane.xlu0 %512 }
 0x127   :  { %v1184_v12 = vpop.xlane.xlu1 %518 }
 0x128   :  { %v654_v7 = vperm.slane %v1184_v12, %v609_v51  ;;  %v625_v12 = vadd.s32 4294967192, %v1188_v20 }
 0x12e   :  { %v444_v13 = vpop.xlane.xlu0 %443 }
 0x12f   :  { %v465_v14 = vpop.xlane.xlu2 %464  ;;  %v492_v15 = vpop.xlane.xlu1 %491  ;;  %v576_v26 = vperm.slane %v444_v13, %v1188_v20 }
 0x130   :  { %v602_v56 = vperm.slane %v465_v14, %v601_v50  ;;  %v637_v57 = vperm.slane %v492_v15, %v1188_v20 }
 0x136   :  { %v447_v16 = vpop.xlane.xlu0 %446 }
 0x137   :  { %v495_v18 = vpop.xlane.xlu1 %494  ;;  %v1186_v19 = vpop.xlane.xlu2 %524  ;;  %v578_v24 = vperm.slane %v447_v16, %v577_v21  ;;  %v650_v16 = vperm.slane %v1180_v11, %v601_v50 }
 0x138   :  { %v638_v52 = vperm.slane %v495_v18, %v577_v21  ;;  %v622_v21 = vperm.slane %v1178_v8, %v621_v60 }
 0x139   :  { %v580_v29 = vsel %vm579_vm2, %v578_v24, %v576_v26 }
 0x13a   :  { %v584_v35 = vsel %vm583_vm3, %v582_v33, %v580_v29  ;;  %v639_v2 = vsel %vm579_vm2, %v638_v52, %v637_v57  ;;  %vm543_vm2 = vcmp.lt.s32.totalorder %v1188_v20, 8 }
 0x13b   :  { %v588_v39 = vsel %vm587_vm4, %v586_v31, %v584_v35 }
 0x13c   :  { %v592_v45 = vsel %vm591_vm5, %v590_v41, %v588_v39 }
 0x13d   :  { %v596_v53 = vsel %vm595_vm6, %v594_v47, %v592_v45 }
 0x13e   :  { %v462_v22 = vpop.xlane.xlu0 %461 }
 0x13f   :  { %v468_v23 = vpop.xlane.xlu1 %467  ;;  %v498_v27 = vpop.xlane.xlu2 %497  ;;  %v598_v46 = vperm.slane %v462_v22, %v597_v40  ;;  %v652_v22 = vperm.slane %v1182_v42, %v605_v48  ;;  %v633_v40 = vadd.s32 4294967176, %v1188_v20 }
 0x140   :  { %v640_v54 = vperm.slane %v498_v27, %v581_v25  ;;  %v606_v55 = vperm.slane %v468_v23, %v605_v48 }
 0x141   :  { %v600_v49 = vsel %vm599_vm7, %v598_v46, %v596_v53 }
 0x142   :  { %v604_v32 = vsel %vm603_vm8, %v602_v56, %v600_v49  ;;  %v641_v0 = vsel %vm583_vm3, %v640_v54, %v639_v2  ;;  %vm680_vm3 = vcmask 1041408  }
 0x143   :  { %v608_v1 = vsel %vm607_vm9, %v606_v55, %v604_v32 }
 0x146   :  { %v1195_v30 = vpop.xlane.xlu0 %521 }
 0x147   :  { %v1199_v36 = vpop.xlane.xlu1 %527  ;;  %v474_v43 = vpop.xlane.xlu2 %473  ;;  %v656_v11 = vperm.slane %v1195_v30, %v613_v61  ;;  %v629_v30 = vadd.s32 4294967184, %v1188_v20 }
 0x148   :  { %v614_v13 = vperm.slane %v474_v43, %v613_v61 }
 0x14e   :  { %v471_v44 = vpop.xlane.xlu0 %470 }
 0x14f   :  { %v501_v38 = vpop.xlane.xlu1 %500  ;;  %v610_v58 = vperm.slane %v471_v44, %v609_v51 }
 0x150   :  { %v642_v59 = vperm.slane %v501_v38, %v585_v28 }
 0x151   :  { %v612_v6 = vsel %vm611_vm10, %v610_v58, %v608_v1 }
 0x152   :  { %v643_v9 = vsel %vm587_vm4, %v642_v59, %v641_v0  ;;  %v616_v24 = vsel %vm615_vm11, %v614_v13, %v612_v6 }
 0x156   :  { %v504_v62 = vpop.xlane.xlu0 %503  ;;  %v507_v63 = vpop.xlane.xlu2 %506 }
 0x157   :  { %v644_v3 = vperm.slane %v504_v62, %v589_v34  ;;  %v646_v4 = vperm.slane %v507_v63, %v593_v37  ;;  %v477_v15 = vpop.xlane.xlu1 %476  ;;  %v658_v34 = vperm.slane %v1186_v19, %v617_v5  ;;  %v660_v37 = vperm.slane %v1199_v36, %v621_v60 }
 0x158   :  { %v618_v18 = vperm.slane %v477_v15, %v617_v5 }
 0x159   :  { %v645_v14 = vsel %vm591_vm5, %v644_v3, %v643_v9 }
 0x15a   :  { %v647_v17 = vsel %vm595_vm6, %v646_v4, %v645_v14  ;;  %v620_v26 = vsel %vm619_vm12, %v618_v18, %v616_v24 }
 0x15b   :  { %v649_v23 = vsel %vm599_vm7, %v648_v10, %v647_v17  ;;  %v624_v28 = vsel %vm623_vm13, %v622_v21, %v620_v26 }
 0x15c   :  { %v651_v25 = vsel %vm603_vm8, %v650_v16, %v649_v23 }
 0x15d   :  { %v653_v27 = vsel %vm607_vm9, %v652_v22, %v651_v25 }
 0x15e   :  { %v531_v29 = vpop.xlane.xlu0 %530  ;;  %v655_v8 = vsel %vm611_vm10, %v654_v7, %v653_v27  ;;  %v483_v42 = vpop.xlane.xlu2 %482 }
 0x15f   :  { %v657_v33 = vsel %vm615_vm11, %v656_v11, %v655_v8  ;;  %v486_v35 = vpop.xlane.xlu1 %485  ;;  %v626_v39 = vperm.slane %v483_v42, %v625_v12  ;;  %v662_v43 = vperm.slane %v531_v29, %v625_v12 }
 0x160   :  { %v659_v31 = vsel %vm619_vm12, %v658_v34, %v657_v33  ;;  %v630_v46 = vperm.slane %v486_v35, %v629_v30 }
 0x161   :  { %v661_v41 = vsel %vm623_vm13, %v660_v37, %v659_v31  ;;  %v628_v48 = vsel %vm627_vm14, %v626_v39, %v624_v28 }
 0x162   :  { %v663_v47 = vsel %vm627_vm14, %v662_v43, %v661_v41  ;;  %v632_v52 = vsel %vm631_vm15, %v630_v46, %v628_v48 }
 0x166   :  { %v489_v44 = vpop.xlane.xlu0 %488  ;;  %v534_v45 = vpop.xlane.xlu2 %533 }
 0x167   :  { %v664_v19 = vperm.slane %v534_v45, %v629_v30  ;;  %v634_v50 = vperm.slane %v489_v44, %v633_v40  ;;  %v537_v36 = vpop.xlane.xlu1 %536 }
 0x168   :  { %v666_v51 = vperm.slane %v537_v36, %v633_v40 }
 0x169   :  { %v665_v38 = vsel %vm631_vm15, %v664_v19, %v663_v47  ;;  %v636_v53 = vsel %vm635_vm0, %v634_v50, %v632_v52 }
 0x16a   :  { %v667_v49 = vsel %vm635_vm0, %v666_v51, %v665_v38 }
 0x16b   :  { %v669_v54 = vsel %vm668_vm1, %v667_v49, %v636_v53 }
 0x16c   :  { %v671_v55 = vsel %vm543_vm2, %v669_v54, -1e+30 }
 0x16d   :  { %675 = vst [vmem:[#allocation3] sm:$0x3] %v671_v55 }
 0x174   :  { %v679_v56 = vld [vmem:[#allocation3] sm:$0x3] }
 0x175   :  { %v681_v57 = vsel %vm680_vm3, %v679_v56, -inf }
 0x176   :  { %682 = vmax.xlane.f32.xlu2 %v681_v57 }
 0x1e9   :  { %v683_v58 = vpop.xlane.xlu2 %682 }
 0x1ea   :  { %v684_v59 = vsub.f32 %v679_v56, %v683_v58 }
 0x1ec   :  { %v685_v60 = vmul.f32 1.442695, %v684_v59 }
 0x1ee   :  { %913 = vpow2.f32 %v685_v60 }
 0x1f4   :  { %v914_v2 = vpop.eup %913 }
 0x1f5   :  { %v687_v32 = vsel %vm680_vm3, %v914_v2, 0.0 }
 0x1f6   :  { %688 = vadd.xlane.f32.xlu0 %v687_v32 }
 0x269   :  { %v689_v61 = vpop.xlane.xlu0 %688 }
 0x26a   :  { %915 = vrcp.f32 %v689_v61  ;;  %v701_v0 = vand.u32 2147483648, %v689_v61  ;;  %v699_v3 = vand.u32 2147483647, %v689_v61  ;;  %vm695_vm5 = vweird.f32 %v689_v61 }
 0x26c   :  { %v702_v5 = vor.u32 1.1754944e-38, %v701_v0  ;;  %vm700_vm7 = vcmp.eq.f32.partialorder %v699_v3, 8.507059e+37 }
 0x270   :  { %v916_v62 = vpop.eup %915 }
 0x271   :  { %v691_v20 = vmul.f32 %v916_v62, %v689_v61  ;;  %vm696_vm4 = vweird.f32 %v916_v62 }
 0x272   :  { %vm697_vm6 = vmor %vm695_vm5, %vm696_vm4 }
 0x273   :  { %v692_v63 = vsub.f32 1.0, %v691_v20 }
 0x275   :  { %v693_v1 = vmul.f32 %v916_v62, %v692_v63 }
 0x277   :  { %v694_v4 = vadd.f32 %v916_v62, %v693_v1 }
 0x279   :  { %v698_v6 = vsel %vm697_vm6, %v916_v62, %v694_v4 }
 0x27a   :  { %v703_v9 = vsel %vm700_vm7, %v702_v5, %v698_v6 }
 0x27b   :  { %v704_v10 = vmul.f32 %v914_v2, %v703_v9 }
 0x27d   :  { %705 = vst [vmem:[#allocation3] sm:$0x3] %v704_v10 }
 0x27e   :  { %716 = dma.vmem_to_hbm [thread:$0]  %s712_s11, 32, %s714_s14, [#allocation4]  }
 0x27f   :  { %941 = dma.done.wait [#allocation4], 32  }
 0x280   :  { %942 = vsyncadd [#allocation4], 4294967264 }
 0x281   :  { %721 = vsyncpa [#allocation4], 1 }

</bundles_post_ra>
